<compile_context>
chip_gen: v5e
topology: v5e:2x2
jax: 0.10.0
libtpu: 0.0.40
codegen_flags: <defaults>
</compile_context>

<pallas_src>
import jax
import jax.numpy as jnp
from jax.experimental import pallas as pl
from jax.experimental.pallas import tpu as pltpu

_LANE_COLS = 512              # lane-dense width: 4 vregs per row (multiple of 128)
_BLOCK_ROWS = 512             # 512 x 512 f32 block = 1 MiB -> ~4 MiB VMEM double-buffered
_MIN_PALLAS_BYTES = 1 << 20   # below ~1 MiB a fused XLA add is strictly faster


def _add_one_kernel(x_ref, o_ref):
    # Pure VPU elementwise add on a full lane-dense tile.
    o_ref[...] = x_ref[...] + jnp.asarray(1, dtype=o_ref.dtype)


def _add_one_pallas_2d(x2: jax.Array) -> jax.Array:
    rows, cols = x2.shape
    # Single block (== full array dims) for small row counts, otherwise tile
    # rows at _BLOCK_ROWS so the pipeline double-buffers HBM<->VMEM DMAs.
    block_rows = rows if rows <= _BLOCK_ROWS else _BLOCK_ROWS
    grid = (pl.cdiv(rows, block_rows),)
    return pl.pallas_call(
        _add_one_kernel,
        out_shape=jax.ShapeDtypeStruct((rows, cols), x2.dtype),
        grid=grid,
        in_specs=[pl.BlockSpec((block_rows, cols), lambda i: (i, 0))],
        out_specs=pl.BlockSpec((block_rows, cols), lambda i: (i, 0)),
        input_output_aliases={0: 0},  # x+1 may overwrite the (intermediate) input slab
        compiler_params=pltpu.CompilerParams(
            dimension_semantics=("parallel",),
        ),
    )(x2)


def my_neural_network_forward(x: jax.Array, *, force_pallas: bool = False) -> jax.Array:
    """Pallas implementation of MyNeuralNetwork.forward: returns x + 1."""
    n = x.size
    if n == 0:
        return x + jnp.asarray(1, dtype=x.dtype)

    nbytes = n * x.dtype.itemsize
    if not force_pallas and nbytes < _MIN_PALLAS_BYTES:
        # Tiny tensor: kernel launch + grid-step overhead dwarfs the add;
        # let XLA fuse it with neighbors.
        return x + jnp.asarray(1, dtype=x.dtype)

    orig_shape = x.shape
    flat = x.reshape(-1)

    # Lane-dense layout: pad the flat length to a multiple of _LANE_COLS and,
    # when multi-block, to a multiple of the full block so every block is full.
    cols = _LANE_COLS
    rows = pl.cdiv(n, cols)
    if rows > _BLOCK_ROWS:
        rows = pl.cdiv(rows, _BLOCK_ROWS) * _BLOCK_ROWS
    padded = rows * cols
    if padded != n:
        flat = jnp.pad(flat, (0, padded - n))
    x2 = flat.reshape(rows, cols)

    out2 = _add_one_pallas_2d(x2)
    return out2.reshape(-1)[:n].reshape(orig_shape)


if __name__ == "__main__":
    key = jax.random.PRNGKey(0)
    k0, k1 = jax.random.split(key)

    # NCHW input, small shape consistent with the module: batch=2, channels=4, 16x16
    x = jax.random.normal(k0, (2, 4, 16, 16), dtype=jnp.float32)
    y = jax.block_until_ready(my_neural_network_forward(x, force_pallas=True))
    ref = x + 1.0
    assert y.shape == x.shape and y.dtype == x.dtype
    assert jnp.allclose(y, ref), "mismatch vs reference (small f32)"

    # Exercise the multi-block (tiled, pipelined) path: 2 MiB -> 1024 rows -> 2 blocks.
    xl = jax.random.normal(k1, (8, 4, 128, 128), dtype=jnp.float32)
    yl = jax.block_until_ready(my_neural_network_forward(xl, force_pallas=True))
    assert jnp.allclose(yl, xl + 1.0), "mismatch vs reference (tiled path)"

    # Integer path analogous to sample_calcu(): [1,2,3] -> [2,3,4]
    xi = jnp.array([1, 2, 3], dtype=jnp.int32)
    yi = jax.block_until_ready(my_neural_network_forward(xi, force_pallas=True))
    assert jnp.array_equal(yi, jnp.array([2, 3, 4], dtype=jnp.int32))

    # Default (non-forced) small-input fast path still gives the right answer.
    yf = jax.block_until_ready(my_neural_network_forward(x))
    assert jnp.allclose(yf, ref)

    print("KERNEL_OK")
</pallas_src>

<mosaic_0001>
module attributes {stable_mosaic.version = 11 : i64} {
  func.func @_add_one_kernel(%arg0: i32, %arg1: memref<4x512xf32, #tpu.memory_space<vmem>>, %arg2: memref<4x512xf32, #tpu.memory_space<vmem>>) attributes {dimension_semantics = [#tpu.dimension_semantics<parallel>], iteration_bounds = array<i64: 1>, scalar_prefetch = 0 : i64, scratch_operands = 0 : i64, tpu.core_type = #tpu.core_type<tc>, window_params = [{transform_indices = @transform_0, window_bounds = array<i64: 4, 512>}, {transform_indices = @transform_1, window_bounds = array<i64: 4, 512>}]} {
    %c0 = arith.constant 0 : index
    %c0_0 = arith.constant 0 : index
    %0 = vector.load %arg1[%c0, %c0_0] : memref<4x512xf32, #tpu.memory_space<vmem>>, vector<4x512xf32>
    %cst = arith.constant 1.000000e+00 : f32
    %1 = vector.broadcast %cst : f32 to vector<4x512xf32>
    %2 = arith.addf %0, %1 : vector<4x512xf32>
    %c0_1 = arith.constant 0 : index
    %c0_2 = arith.constant 0 : index
    %3 = vector.load %arg2[%c0_1, %c0_2] : memref<4x512xf32, #tpu.memory_space<vmem>>, vector<4x512xf32>
    tpu.vector_store %arg2[%c0_1, %c0_2], %2 {strides = array<i32>} : memref<4x512xf32, #tpu.memory_space<vmem>>, vector<4x512xf32>,
    return
  }
  func.func @transform_0(%arg0: i32) -> (i32, i32) {
    %c0_i32 = arith.constant 0 : i32
    %c0_i32_0 = arith.constant 0 : i32
    return %arg0, %c0_i32 : i32, i32
  }
  func.func @transform_1(%arg0: i32) -> (i32, i32) {
    %c0_i32 = arith.constant 0 : i32
    %c0_i32_0 = arith.constant 0 : i32
    return %arg0, %c0_i32 : i32, i32
  }
}

</mosaic_0001>

<bundles_post_ra>
// kernel: tpu_custom_call.1
= control target key start
LH: loop header
LB: loop body
LE: loop exit
PB: predicated region body
PF: predicated region fallthrough
CT: control target
= control target key end

     0   :  { %6 = vsyncpa [#allocation3], 0  ;;  %s118_s0 = inlined_call_operand.hbm [shape: f32[4,512], index: 0, kind: input, shape index: {}, may-alias: {0,1}]   ;;  %s119_s1 = inlined_call_operand.hbm [shape: f32[4,512], index: 1, kind: output, shape index: {}, may-alias: {0,1}]  }
   0x1   :  { %7 = vsyncpa [#allocation4], 0  ;;  %s13_s8 = sshll.u32 %s118_s0, 4  ;;  %s100_s9 = smov [#allocation2]   ;;  %s14_s8 = int_to_ptr.hbm [resolvable:$true] %s13_s8 }
   0x2   :  { %s15_s10 = sshll.u32 %s100_s9, 4  ;;  %s16_s10 = int_to_ptr.vmem [resolvable:$true] %s15_s10 }
   0x3   :  { %18 = dma.hbm_to_vmem [thread:$0]  %s14_s8, 256, %s16_s10, [#allocation3]  }
   0x4   :  { %96 = dma.done.wait [#allocation3], 256  }
   0x5   :  { %97 = vsyncadd [#allocation3], 4294967040  ;;  %s101_s11 = smov [#allocation5]   ;;  %s36_s15 = sshll.u32 %s119_s1, 4  ;;  %v23_v0 = vld [vmem:[#allocation2] sm:$0xff]  ;;  %v24_v1 = vld [vmem:[#allocation2 + $0x8] sm:$0xff]  ;;  %s37_s15 = int_to_ptr.hbm [resolvable:$true] %s36_s15 }
   0x6   :  { %s34_s12 = sshll.u32 %s101_s11, 4  ;;  %v25_v2 = vadd.f32 1.0, %v23_v0  ;;  %v26_v3 = vadd.f32 1.0, %v24_v1  ;;  %s35_s12 = int_to_ptr.vmem [resolvable:$true] %s34_s12 }
   0x8   :  { %27 = vst [vmem:[#allocation5] sm:$0xff] %v25_v2 }
   0x9   :  { %28 = vst [vmem:[#allocation5 + $0x8] sm:$0xff] %v26_v3 }
   0xa   :  { %39 = dma.vmem_to_hbm [thread:$0]  %s35_s12, 256, %s37_s15, [#allocation4]  }
   0xb   :  { %98 = dma.done.wait [#allocation4], 256  }
   0xc   :  { %99 = vsyncadd [#allocation4], 4294967040 }
   0xd   :  { %44 = vsyncpa [#allocation3], 1 }
   0xe   :  { %45 = vsyncpa [#allocation4], 1 }

</bundles_post_ra>
